<compile_context>
chip_gen: v7x
topology: tpu7x:2x2x1
jax: 0.10.0
libtpu: 0.0.40
codegen_flags: <defaults>
</compile_context>

<pallas_src>
import jax
import jax.numpy as jnp
from jax import lax
from jax.experimental import pallas as pl
from jax.experimental.pallas import tpu as pltpu  # noqa: F401  (TPU backend import)


def _weighted_linear_sum_kernel(x_ref, w_ref, b_ref, o_ref):
    """y = sum_i (i+1) * (x @ W_i^T + b_i), fused into one matmul.

    x_ref: (B, D_in)         VMEM
    w_ref: (L, D_out, D_in)  VMEM  (PyTorch nn.Linear (out, in) layout, stacked)
    b_ref: (L, 1, D_out)     VMEM
    o_ref: (B, D_out)        VMEM
    """
    L = w_ref.shape[0]

    # Fold the L coefficient-weighted layers into one combined weight / bias
    # on the VPU (static unrolled loop over the tiny leading axis).
    w_comb = w_ref[0].astype(jnp.float32)          # (D_out, D_in)
    b_comb = b_ref[0].astype(jnp.float32)          # (1, D_out)
    for i in range(1, L):
        c = float(i + 1)
        w_comb = w_comb + c * w_ref[i]
        b_comb = b_comb + c * b_ref[i]

    # Single MXU matmul: x @ W_comb^T, with the transpose folded into the
    # contraction dims (no transposed copy materialized).
    acc = lax.dot_general(
        x_ref[...], w_comb,
        dimension_numbers=(((1,), (1,)), ((), ())),
        preferred_element_type=jnp.float32,
    )                                               # (B, D_out)
    o_ref[...] = (acc + b_comb).astype(o_ref.dtype)


def test_model_forward(x, W, b):
    """x: (B, D); W: (L, D, D) in PyTorch (out, in) convention; b: (L, D)."""
    B, D = x.shape
    L = W.shape[0]
    # Reshape of the bias is pure layout plumbing (keeps every in-kernel
    # operand >= 2-D); all arrays are passed as single full VMEM blocks.
    return pl.pallas_call(
        _weighted_linear_sum_kernel,
        out_shape=jax.ShapeDtypeStruct((B, D), x.dtype),
    )(x, W, b.reshape(L, 1, D))


if __name__ == "__main__":
    # Small shapes consistent with the module: args.dim = 32, args.layers = 4, batch = 8.
    B, D, L = 8, 32, 4

    key = jax.random.PRNGKey(0)
    kx, kw, kb = jax.random.split(key, 3)

    # Deterministic parameter init (mimics nn.Linear default uniform(+-1/sqrt(dim))).
    bound = 1.0 / jnp.sqrt(jnp.float32(D))
    x = jax.random.normal(kx, (B, D), dtype=jnp.float32)
    W = jax.random.uniform(kw, (L, D, D), dtype=jnp.float32, minval=-bound, maxval=bound)
    b = jax.random.uniform(kb, (L, D), dtype=jnp.float32, minval=-bound, maxval=bound)

    out = jax.jit(test_model_forward)(x, W, b)
    out = jax.block_until_ready(out)

    # Pure-JAX reference check of the per-layer forward semantics.
    ref = sum((i + 1) * (x @ W[i].T + b[i]) for i in range(L))
    assert out.shape == (B, D)
    assert jnp.allclose(out, ref, atol=1e-4, rtol=1e-4), "mismatch vs reference"

    print("KERNEL_OK")
</pallas_src>

<mosaic_0001>
module attributes {stable_mosaic.version = 11 : i64} {
  func.func @_weighted_linear_sum_kernel(%arg0: memref<8x32xf32, #tpu.memory_space<vmem>>, %arg1: memref<4x32x32xf32, #tpu.memory_space<vmem>>, %arg2: memref<4x1x32xf32, #tpu.memory_space<vmem>>, %arg3: memref<8x32xf32, #tpu.memory_space<vmem>>) attributes {dimension_semantics = [], scalar_prefetch = 0 : i64, scratch_operands = 0 : i64, tpu.core_type = #tpu.core_type<tc>} {
    %c0 = arith.constant 0 : index
    %c0_0 = arith.constant 0 : index
    %c0_1 = arith.constant 0 : index
    %0 = vector.load %arg1[%c0, %c0_0, %c0_1] : memref<4x32x32xf32, #tpu.memory_space<vmem>>, vector<1x32x32xf32>
    %1 = vector.shape_cast %0 : vector<1x32x32xf32> to vector<32x32xf32>
    %c0_2 = arith.constant 0 : index
    %c0_3 = arith.constant 0 : index
    %c0_4 = arith.constant 0 : index
    %2 = vector.load %arg2[%c0_2, %c0_3, %c0_4] : memref<4x1x32xf32, #tpu.memory_space<vmem>>, vector<1x1x32xf32>
    %3 = vector.shape_cast %2 : vector<1x1x32xf32> to vector<1x32xf32>
    %c1 = arith.constant 1 : index
    %c0_5 = arith.constant 0 : index
    %c0_6 = arith.constant 0 : index
    %4 = vector.load %arg1[%c1, %c0_5, %c0_6] : memref<4x32x32xf32, #tpu.memory_space<vmem>>, vector<1x32x32xf32>
    %5 = vector.shape_cast %4 : vector<1x32x32xf32> to vector<32x32xf32>
    %cst = arith.constant 2.000000e+00 : f32
    %6 = vector.broadcast %cst : f32 to vector<32x32xf32>
    %7 = arith.mulf %6, %5 : vector<32x32xf32>
    %8 = arith.addf %1, %7 : vector<32x32xf32>
    %c1_7 = arith.constant 1 : index
    %c0_8 = arith.constant 0 : index
    %c0_9 = arith.constant 0 : index
    %9 = vector.load %arg2[%c1_7, %c0_8, %c0_9] : memref<4x1x32xf32, #tpu.memory_space<vmem>>, vector<1x1x32xf32>
    %10 = vector.shape_cast %9 : vector<1x1x32xf32> to vector<1x32xf32>
    %cst_10 = arith.constant 2.000000e+00 : f32
    %11 = vector.broadcast %cst_10 : f32 to vector<1x32xf32>
    %12 = arith.mulf %11, %10 : vector<1x32xf32>
    %13 = arith.addf %3, %12 : vector<1x32xf32>
    %c2 = arith.constant 2 : index
    %c0_11 = arith.constant 0 : index
    %c0_12 = arith.constant 0 : index
    %14 = vector.load %arg1[%c2, %c0_11, %c0_12] : memref<4x32x32xf32, #tpu.memory_space<vmem>>, vector<1x32x32xf32>
    %15 = vector.shape_cast %14 : vector<1x32x32xf32> to vector<32x32xf32>
    %cst_13 = arith.constant 3.000000e+00 : f32
    %16 = vector.broadcast %cst_13 : f32 to vector<32x32xf32>
    %17 = arith.mulf %16, %15 : vector<32x32xf32>
    %18 = arith.addf %8, %17 : vector<32x32xf32>
    %c2_14 = arith.constant 2 : index
    %c0_15 = arith.constant 0 : index
    %c0_16 = arith.constant 0 : index
    %19 = vector.load %arg2[%c2_14, %c0_15, %c0_16] : memref<4x1x32xf32, #tpu.memory_space<vmem>>, vector<1x1x32xf32>
    %20 = vector.shape_cast %19 : vector<1x1x32xf32> to vector<1x32xf32>
    %cst_17 = arith.constant 3.000000e+00 : f32
    %21 = vector.broadcast %cst_17 : f32 to vector<1x32xf32>
    %22 = arith.mulf %21, %20 : vector<1x32xf32>
    %23 = arith.addf %13, %22 : vector<1x32xf32>
    %c3 = arith.constant 3 : index
    %c0_18 = arith.constant 0 : index
    %c0_19 = arith.constant 0 : index
    %24 = vector.load %arg1[%c3, %c0_18, %c0_19] : memref<4x32x32xf32, #tpu.memory_space<vmem>>, vector<1x32x32xf32>
    %25 = vector.shape_cast %24 : vector<1x32x32xf32> to vector<32x32xf32>
    %cst_20 = arith.constant 4.000000e+00 : f32
    %26 = vector.broadcast %cst_20 : f32 to vector<32x32xf32>
    %27 = arith.mulf %26, %25 : vector<32x32xf32>
    %28 = arith.addf %18, %27 : vector<32x32xf32>
    %c3_21 = arith.constant 3 : index
    %c0_22 = arith.constant 0 : index
    %c0_23 = arith.constant 0 : index
    %29 = vector.load %arg2[%c3_21, %c0_22, %c0_23] : memref<4x1x32xf32, #tpu.memory_space<vmem>>, vector<1x1x32xf32>
    %30 = vector.shape_cast %29 : vector<1x1x32xf32> to vector<1x32xf32>
    %cst_24 = arith.constant 4.000000e+00 : f32
    %31 = vector.broadcast %cst_24 : f32 to vector<1x32xf32>
    %32 = arith.mulf %31, %30 : vector<1x32xf32>
    %33 = arith.addf %23, %32 : vector<1x32xf32>
    %c0_25 = arith.constant 0 : index
    %c0_26 = arith.constant 0 : index
    %34 = vector.load %arg0[%c0_25, %c0_26] : memref<8x32xf32, #tpu.memory_space<vmem>>, vector<8x32xf32>
    %cst_27 = arith.constant dense<0.000000e+00> : vector<8x32xf32>
    %35 = tpu.matmul %34, %28, %cst_27 {dimension_numbers = #tpu.dot_dimension_numbers<[1], [1], [0], [0], [0, 0, 1, 0], [], []>} : vector<8x32xf32>, vector<32x32xf32>, vector<8x32xf32> -> vector<8x32xf32>
    %36 = vector.broadcast %33 : vector<1x32xf32> to vector<8x32xf32>
    %37 = arith.addf %35, %36 : vector<8x32xf32>
    %c0_28 = arith.constant 0 : index
    %c0_29 = arith.constant 0 : index
    %38 = vector.load %arg3[%c0_28, %c0_29] : memref<8x32xf32, #tpu.memory_space<vmem>>, vector<8x32xf32>
    tpu.vector_store %arg3[%c0_28, %c0_29], %37 {strides = array<i32>} : memref<8x32xf32, #tpu.memory_space<vmem>>, vector<8x32xf32>,
    return
  }
}

</mosaic_0001>

<bundles_post_ra>
// kernel: test_model_forward.1
= control target key start
LH: loop header
LB: loop body
LE: loop exit
PB: predicated region body
PF: predicated region fallthrough
CT: control target
= control target key end

     0   :  { %8 = vsyncpa [#allocation3], 0  ;;  %s406_s0 = inlined_call_operand.hbm [shape: f32[8,32], index: 0, kind: input, shape index: {}]   ;;  %s407_s1 = inlined_call_operand.hbm [shape: f32[4,32,32], index: 1, kind: input, shape index: {}]   ;;  %s408_s2 = inlined_call_operand.vmem [shape: f32[4,1,32], index: 2, kind: input, shape index: {}]   ;;  %s409_s3 = inlined_call_operand.hbm [shape: f32[8,32], index: 3, kind: output, shape index: {}]  }
   0x1   :  { %9 = vsyncpa [#allocation6], 0 }
   0x2   :  { %10 = vsyncpa [#allocation4], 0  ;;  %s319_s12 = smov [#allocation2]   ;;  %s320_s14 = smov [#allocation5]  }
   0x3   :  { %s17_s13 = sshll.u32 %s319_s12, 4  ;;  %s26_s15 = sshll.u32 %s320_s14, 4  ;;  %s18_s13 = int_to_ptr.vmem [resolvable:$true] %s17_s13  ;;  %s347_s15 = int_to_ptr.vmem [resolvable:$true] %s26_s15 }
   0x4   :  { %s247_s18 = scalar_lea.hbm %s406_s0, 128 }
   0x5   :  { %p248_p0 = scmp.ne.s32.totalorder %s406_s0, %s247_s18  ;;  %p251_p1 = scmp.lt.u32.totalorder %s247_s18, %s406_s0 }
   0x7   :  { %p253_p2 = pnand %p251_p1, %p248_p0 }
   0x9   :  { %256 = shalt.err (!%p253_p2)
}
   0xa   :  { %s257_s23 = scalar_lea.vmem %s18_s13, 128  ;;  %p262_p4 = scmp.lt.s32.totalorder %s18_s13, %s18_s13 }
   0xb   :  { %p258_p3 = scmp.ne.s32.totalorder %s18_s13, %s257_s23  ;;  %p263_p5 = scmp.lt.s32.totalorder %s257_s23, %s257_s23 }
   0xd   :  { %p264_p6 = por %p263_p5, %p262_p4 }
   0xf   :  { %p265_p7 = pnand %p264_p6, %p258_p3 }
  0x11   :  { %268 = shalt.err (!%p265_p7)
}
  0x12   :  { %20 = dma.hbm_to_vmem [thread:$0]  %s406_s0, 128, %s18_s13, [#allocation3]  }
  0x13   :  { %s269_s28 = scalar_lea.hbm %s407_s1, 2048 }
  0x14   :  { %p270_p8 = scmp.ne.s32.totalorder %s407_s1, %s269_s28  ;;  %p273_p9 = scmp.lt.u32.totalorder %s269_s28, %s407_s1 }
  0x16   :  { %p275_p10 = pnand %p273_p9, %p270_p8 }
  0x18   :  { %278 = shalt.err (!%p275_p10)
}
  0x19   :  { %s279_s6 = scalar_lea.vmem %s347_s15, 2048  ;;  %p284_p12 = scmp.lt.s32.totalorder %s347_s15, %s347_s15 }
  0x1a   :  { %p280_p11 = scmp.ne.s32.totalorder %s347_s15, %s279_s6  ;;  %p285_p13 = scmp.lt.s32.totalorder %s279_s6, %s279_s6 }
  0x1c   :  { %p286_p0 = por %p285_p13, %p284_p12 }
  0x1e   :  { %p287_p1 = pnand %p286_p0, %p280_p11 }
  0x20   :  { %290 = shalt.err (!%p287_p1)
}
  0x21   :  { %s321_s0 = smov 128   ;;  %s322_s7 = smov 8  }
  0x22   :  { %32 = dma.hbm_to_vmem [thread:$0]  %s407_s1, 2048, %s347_s15, [#allocation6], %s321_s0, %s321_s0, %s322_s7  }
  0x23   :  { %313 = dma.done.wait [#allocation3], 128  }
  0x24   :  { %314 = vsyncadd [#allocation3], 4294967168 }
  0x25   :  { %315 = dma.done.wait [#allocation6], 2048  }
  0x26   :  { %316 = vsyncadd [#allocation6], 4294965248  ;;  %v323_v0 = vmov 0.0|0.0   ;;  %vm324_vm0 = vmmov 0   ;;  %v325_v1 = vmov 0.0   ;;  %v41_v2 = vld [vmem:[#allocation5] sm:$0xff]  ;;  %v99_v51 = vlaneseq }
  0x27   :  { %231 = vmatprep.subr.bf16.mxu0 %v323_v0  ;;  %228 = vmatprep.mubr.msk.f32.mxu0 %vm324_vm0, %v325_v1  ;;  %v42_v3 = vld [vmem:[#allocation5 + $0x8] sm:$0xff]  ;;  %v47_v4 = vld [vmem:[#allocation5 + $0x20] sm:$0xff]  ;;  %v43_v14 = vld [vmem:[#allocation5 + $0x10] sm:$0xff]  ;;  %vm104_vm1 = vcmask 261120   ;;  %s326_s17 = smov [#allocation7]  }
  0x28   :  { %v48_v5 = vld [vmem:[#allocation5 + $0x28] sm:$0xff]  ;;  %v51_v6 = vmul.f32 2.0, %v47_v4  ;;  %v64_v7 = vld [vmem:[#allocation5 + $0x40] sm:$0xff]  ;;  %v44_v17 = vld [vmem:[#allocation5 + $0x18] sm:$0xff]  ;;  %v100_v55 = vshrl.u32 %v99_v51, 7  ;;  %s197_s18 = sshll.u32 %s326_s17, 4  ;;  %s198_s18 = int_to_ptr.vmem [resolvable:$true] %s197_s18 }
  0x29   :  { %v65_v8 = vld [vmem:[#allocation5 + $0x48] sm:$0xff]  ;;  %v52_v9 = vmul.f32 2.0, %v48_v5  ;;  %v68_v10 = vmul.f32 3.0, %v64_v7  ;;  %v81_v12 = vld [vmem:[#allocation5 + $0x60] sm:$0xff]  ;;  %v49_v18 = vld [vmem:[#allocation5 + $0x30] sm:$0xff]  ;;  %s291_s19 = scalar_lea.vmem %s198_s18, 128  ;;  %p296_p3 = scmp.lt.s32.totalorder %s198_s18, %s198_s18 }
  0x2a   :  { %v69_v11 = vmul.f32 3.0, %v65_v8  ;;  %v82_v13 = vld [vmem:[#allocation5 + $0x68] sm:$0xff]  ;;  %v55_v15 = vadd.f32 %v51_v6, %v41_v2  ;;  %v85_v16 = vmul.f32 4.0, %v81_v12  ;;  %v50_v19 = vld [vmem:[#allocation5 + $0x38] sm:$0xff]  ;;  %v53_v22 = vmul.f32 2.0, %v49_v18  ;;  %v66_v24 = vld [vmem:[#allocation5 + $0x50] sm:$0xff]  ;;  %p292_p2 = scmp.ne.s32.totalorder %s198_s18, %s291_s19  ;;  %p297_p4 = scmp.lt.s32.totalorder %s291_s19, %s291_s19 }
  0x2b   :  { %v56_v20 = vadd.f32 %v52_v9, %v42_v3  ;;  %v86_v21 = vmul.f32 4.0, %v82_v13  ;;  %v54_v23 = vmul.f32 2.0, %v50_v19  ;;  %v67_v25 = vld [vmem:[#allocation5 + $0x58] sm:$0xff]  ;;  %v83_v26 = vld [vmem:[#allocation5 + $0x70] sm:$0xff]  ;;  %v70_v28 = vmul.f32 3.0, %v66_v24  ;;  %vm233_vm2 = vmpackc.low %vm104_vm1, %vm104_vm1 }
  0x2c   :  { %v72_v27 = vadd.f32 %v68_v10, %v55_v15  ;;  %v71_v29 = vmul.f32 3.0, %v67_v25  ;;  %v84_v30 = vld [vmem:[#allocation5 + $0x78] sm:$0xff]  ;;  %v57_v32 = vadd.f32 %v53_v22, %v43_v14  ;;  %v87_v35 = vmul.f32 4.0, %v83_v26  ;;  %p298_p5 = por %p297_p4, %p296_p3 }
  0x2d   :  { %v73_v31 = vadd.f32 %v69_v11, %v56_v20  ;;  %v58_v33 = vadd.f32 %v54_v23, %v44_v17  ;;  %v88_v39 = vmul.f32 4.0, %v84_v30  ;;  %v97_v44 = vld [vmem:[#allocation2] sm:$0xff]  ;;  %v101_v57 = vsub.s32 0, %v100_v55 }
  0x2e   :  { %v89_v34 = vadd.f32 %v85_v16, %v72_v27  ;;  %v74_v37 = vadd.f32 %v70_v28, %v57_v32  ;;  %v207_v45 = vld [vmem:[%s408_s2 + $0x1] sm:$0x1]  ;;  %v45_v47 = vld [vmem:[%s408_s2] sm:$0x1]  ;;  %v208_v48 = vld [vmem:[%s408_s2 + $0x2] sm:$0x1]  ;;  %p299_p6 = pnand %p298_p5, %p292_p2 }
  0x2f   :  { %v90_v36 = vadd.f32 %v86_v21, %v73_v31  ;;  %v75_v38 = vadd.f32 %v71_v29, %v58_v33  ;;  %v61_v46 = vmul.f32 2.0, %v207_v45  ;;  %v78_v50 = vmul.f32 3.0, %v208_v48  ;;  %v209_v52 = vld [vmem:[%s408_s2 + $0x3] sm:$0x1] }
  0x30   :  { %v91_v41 = vadd.f32 %v87_v35, %v74_v37  ;;  %v95_v54 = vmul.f32 4.0, %v209_v52 }
  0x31   :  { %v232_v40 = vpack.c.bf16 %v90_v36, %v89_v34  ;;  %v92_v42 = vadd.f32 %v88_v39, %v75_v38  ;;  %v62_v49 = vadd.f32 %v61_v46, %v45_v47 }
  0x33   :  { %234 = vmatpush3.bf16.xpose.msk.msra.mxu0 %vm233_vm2, %v232_v40  ;;  %v236_v43 = vpack.c.bf16 %v92_v42, %v91_v41  ;;  %v79_v53 = vadd.f32 %v78_v50, %v62_v49 }
  0x34   :  { %235 = vmatprep.subr.bf16.mxu0 %v323_v0 }
  0x35   :  { %v96_v56 = vadd.f32 %v95_v54, %v79_v53 }
  0x37   :  { %v102_v58 = vrot.slane %v96_v56, %v101_v57 }
  0x3b   :  { %238 = vmatpush3.bf16.xpose.msk.msra.mxu0 %vm233_vm2, %v236_v43 }
  0x42   :  { %229 = vmatmul.mubr.msk.f32.vlgmr.msra.gmra.mrb[0].mxu0 %vm104_vm1, %v97_v44 }
 0x115   :  { %v186_v59 = vpop.f32.mrb[0].mxu0 }
 0x116   :  { %v187_v60 = vadd.f32 %v186_v59, %v102_v58  ;;  %v230_v61 = vpop.f32.mrb[1].mxu0 }
 0x118   :  { %190 = vst.msk [vmem:[#allocation7] sm:$0xff] %vm104_vm1, %v187_v60 }
 0x119   :  { %302 = shalt.err (!%p299_p6)
}
 0x11a   :  { %s303_s21 = scalar_lea.hbm %s409_s3, 128 }
 0x11b   :  { %p304_p7 = scmp.ne.s32.totalorder %s409_s3, %s303_s21  ;;  %p307_p8 = scmp.lt.u32.totalorder %s303_s21, %s409_s3 }
 0x11d   :  { %p309_p9 = pnand %p307_p8, %p304_p7 }
 0x11f   :  { %312 = shalt.err (!%p309_p9)
}
 0x120   :  { %200 = dma.vmem_to_hbm [thread:$0]  %s198_s18, 128, %s409_s3, [#allocation4]  }
 0x121   :  { %317 = dma.done.wait [#allocation4], 128  }
 0x122   :  { %318 = vsyncadd [#allocation4], 4294967168 }
 0x123   :  { %204 = vsyncpa [#allocation3], 1 }
 0x124   :  { %205 = vsyncpa [#allocation6], 1 }
 0x125   :  { %206 = vsyncpa [#allocation4], 1 }

</bundles_post_ra>
